<compile_context>
chip_gen: v6e
topology: v6e:2x2x1
jax: 0.10.0
libtpu: 0.0.40
codegen_flags: <defaults>
</compile_context>

<pallas_src>
import jax
import jax.numpy as jnp
import numpy as np
from jax.experimental import pallas as pl
from jax.experimental.pallas import tpu as pltpu

B, H, W = 2, 16, 16
HW = H * W
LOW_CH, HIGH_CH = 32, 64        # scaled down from (128, 256) for a small example
NEG_SLOPE = 0.2
N_MISC = 11                     # misc columns: [0:9] dw taps, [9] align bias, [10] pw bias

assert W & (W - 1) == 0, "W must be a power of two (bitwise x-index trick)"


def _leaky(x):
    return jnp.where(x > 0, x, NEG_SLOPE * x)


def fusion_kernel(low_ref, high_ref, wa_ref, wp_ref, misc_ref, out_ref):
    """One batch element; channels on sublanes, flattened H*W on lanes."""
    misc = misc_ref[...]                                   # (LOW_CH, 11) f32
    b_align = misc[:, 9:10]                                # (LOW_CH, 1)
    b_point = misc[:, 10:11]                               # (LOW_CH, 1)

    # ---- channel_align: 1x1 conv (+ folded BN1) + LeakyReLU ------------------
    # (LOW_CH, HIGH_CH) @ (HIGH_CH, HW) on the MXU, bf16 operands / f32 acc.
    aligned = jnp.dot(wa_ref[...], high_ref[0].astype(jnp.bfloat16),
                      preferred_element_type=jnp.float32)  # (LOW_CH, HW)
    aligned = _leaky(aligned + b_align)

    # ---- fuse ----------------------------------------------------------------
    fused = low_ref[0] + aligned                           # (LOW_CH, HW) f32

    # ---- depthwise 3x3, padding=1: row-grouped lane rolls + boundary masks ---
    # r = flattened spatial index y*W + x along the lane axis.
    r = jax.lax.broadcasted_iota(jnp.int32, (1, HW), 1)
    x = r & (W - 1)                                        # r % W
    ok_left = x >= 1                    # source col x-1 exists
    ok_right = x <= W - 2               # source col x+1 exists
    ok_up = r >= W                      # source row y-1 exists
    ok_down = r < (H - 1) * W           # source row y+1 exists

    # Horizontal neighbours, masked at row boundaries (shared by all 3 rows).
    g_m1 = jnp.where(ok_left, pltpu.roll(fused, 1, axis=1), 0.0)       # F[.,x-1]
    g_p1 = jnp.where(ok_right, pltpu.roll(fused, HW - 1, axis=1), 0.0)  # F[.,x+1]

    def hsum(ky):                        # horizontal weighted sum of kernel row ky
        return (misc[:, 3 * ky + 0:3 * ky + 1] * g_m1 +
                misc[:, 3 * ky + 1:3 * ky + 2] * fused +
                misc[:, 3 * ky + 2:3 * ky + 3] * g_p1)

    h_top, h_mid, h_bot = hsum(0), hsum(1), hsum(2)

    # Vertical combine: whole-row rolls keep the column index (and hence the
    # horizontal masking already baked into h_top/h_bot) unchanged.
    acc = (h_mid
           + jnp.where(ok_up, pltpu.roll(h_top, W, axis=1), 0.0)
           + jnp.where(ok_down, pltpu.roll(h_bot, HW - W, axis=1), 0.0))

    # ---- pointwise 1x1 (+ folded dw bias & BN2) + LeakyReLU -------------------
    out = jnp.dot(wp_ref[...], acc.astype(jnp.bfloat16),
                  preferred_element_type=jnp.float32)      # (LOW_CH, HW)
    out_ref[0] = _leaky(out + b_point).astype(out_ref.dtype)


def fusion_forward(low_nchw, high_nchw, p):
    """NCHW in / NCHW out, like the PyTorch module (eval-mode BatchNorm)."""
    # Free layout plumbing at the XLA level: flatten spatial so H*W is the
    # lane axis inside the kernel.
    low = low_nchw.reshape(B, LOW_CH, HW)
    high = high_nchw.reshape(B, HIGH_CH, HW)

    # ---- constant-fold BN affines + biases into the conv weights -------------
    wa = p['w_align'] * p['bn1_s']                                  # (HIGH, LOW)
    b_align = p['b_align'] * p['bn1_s'] + p['bn1_b']                # (1, LOW)
    wp = p['pw_w'] * p['bn2_s']                                     # (LOW, LOW)
    b_point = p['dw_b'] @ wp + p['pw_b'] * p['bn2_s'] + p['bn2_b']  # (1, LOW)

    wa_cf = wa.T.astype(jnp.bfloat16)                               # (LOW, HIGH)
    wp_cf = wp.T.astype(jnp.bfloat16)                               # (LOW, LOW)
    misc = jnp.concatenate(
        [p['dw_w'].T,                                               # (LOW, 9)
         b_align.reshape(LOW_CH, 1),
         b_point.reshape(LOW_CH, 1)], axis=1).astype(jnp.float32)   # (LOW, 11)

    out = pl.pallas_call(
        fusion_kernel,
        out_shape=jax.ShapeDtypeStruct((B, LOW_CH, HW), jnp.float32),
        grid=(B,),
        in_specs=[
            pl.BlockSpec((1, LOW_CH, HW), lambda b: (b, 0, 0)),
            pl.BlockSpec((1, HIGH_CH, HW), lambda b: (b, 0, 0)),
            pl.BlockSpec((LOW_CH, HIGH_CH), lambda b: (0, 0)),
            pl.BlockSpec((LOW_CH, LOW_CH), lambda b: (0, 0)),
            pl.BlockSpec((LOW_CH, N_MISC), lambda b: (0, 0)),
        ],
        out_specs=pl.BlockSpec((1, LOW_CH, HW), lambda b: (b, 0, 0)),
        compiler_params=pltpu.CompilerParams(
            dimension_semantics=("parallel",)),   # batch -> both v7x TCs
    )(low, high, wa_cf, wp_cf, misc)
    return out.reshape(B, LOW_CH, H, W)


def fusion_ref(low_nchw, high_nchw, p):
    """Pure-JAX reference mirroring the PyTorch forward (NCHW in/out)."""
    low = jnp.transpose(low_nchw, (0, 2, 3, 1))
    high = jnp.transpose(high_nchw, (0, 2, 3, 1))
    aligned = jnp.einsum('bhwc,cd->bhwd', high, p['w_align']) + p['b_align']
    aligned = aligned * p['bn1_s'] + p['bn1_b']
    aligned = jnp.where(aligned > 0, aligned, NEG_SLOPE * aligned)
    fused = low + aligned
    pad = jnp.pad(fused, ((0, 0), (1, 1), (1, 1), (0, 0)))
    acc = jnp.zeros_like(fused)
    for ky in range(3):
        for kx in range(3):
            acc = acc + pad[:, ky:ky + H, kx:kx + W, :] * p['dw_w'][ky * 3 + kx]
    acc = acc + p['dw_b']
    out = jnp.einsum('bhwc,cd->bhwd', acc, p['pw_w']) + p['pw_b']
    out = out * p['bn2_s'] + p['bn2_b']
    out = jnp.where(out > 0, out, NEG_SLOPE * out)
    return jnp.transpose(out, (0, 3, 1, 2))


def make_params(key):
    ks = jax.random.split(key, 16)

    def init(k, shape, scale):
        return (scale * jax.random.normal(k, shape)).astype(jnp.float32)

    def bn_affine(kg, kb, km, kv):
        # eval-mode BN folded to per-channel scale/shift
        gamma = 1.0 + 0.1 * jax.random.normal(kg, (1, LOW_CH))
        beta = 0.1 * jax.random.normal(kb, (1, LOW_CH))
        mean = 0.1 * jax.random.normal(km, (1, LOW_CH))
        var = 0.5 + jnp.abs(jax.random.normal(kv, (1, LOW_CH)))
        scale = gamma / jnp.sqrt(var + 1e-5)
        shift = beta - mean * scale
        return scale.astype(jnp.float32), shift.astype(jnp.float32)

    bn1_s, bn1_b = bn_affine(ks[6], ks[7], ks[8], ks[9])
    bn2_s, bn2_b = bn_affine(ks[10], ks[11], ks[12], ks[13])
    return dict(
        w_align=init(ks[0], (HIGH_CH, LOW_CH), 0.05),   # 1x1 conv: (in, out)
        b_align=init(ks[1], (1, LOW_CH), 0.05),
        bn1_s=bn1_s, bn1_b=bn1_b,
        dw_w=init(ks[2], (9, LOW_CH), 0.1),             # 3x3 depthwise taps
        dw_b=init(ks[3], (1, LOW_CH), 0.05),
        pw_w=init(ks[4], (LOW_CH, LOW_CH), 0.1),        # 1x1 conv: (in, out)
        pw_b=init(ks[5], (1, LOW_CH), 0.05),
        bn2_s=bn2_s, bn2_b=bn2_b,
    )


if __name__ == "__main__":
    key = jax.random.PRNGKey(0)
    kp, kl, kh = jax.random.split(key, 3)
    params = make_params(kp)
    low_feat = jax.random.normal(kl, (B, LOW_CH, H, W), jnp.float32)    # NCHW
    high_feat = jax.random.normal(kh, (B, HIGH_CH, H, W), jnp.float32)  # NCHW

    out = fusion_forward(low_feat, high_feat, params)
    jax.block_until_ready(out)

    ref = fusion_ref(low_feat, high_feat, params)
    np.testing.assert_allclose(np.asarray(out), np.asarray(ref),
                               rtol=5e-2, atol=5e-2)
    print("KERNEL_OK")
</pallas_src>

<mosaic_0001>
module attributes {stable_mosaic.version = 11 : i64} {
  func.func @fusion_kernel(%arg0: i32, %arg1: memref<1x32x256xf32, #tpu.memory_space<vmem>>, %arg2: memref<1x64x256xf32, #tpu.memory_space<vmem>>, %arg3: memref<32x64xbf16, #tpu.memory_space<vmem>>, %arg4: memref<32x32xbf16, #tpu.memory_space<vmem>>, %arg5: memref<32x11xf32, #tpu.memory_space<vmem>>, %arg6: memref<1x32x256xf32, #tpu.memory_space<vmem>>) attributes {dimension_semantics = [#tpu.dimension_semantics<parallel>], iteration_bounds = array<i64: 2>, scalar_prefetch = 0 : i64, scratch_operands = 0 : i64, tpu.core_type = #tpu.core_type<tc>, window_params = [{transform_indices = @transform_0, window_bounds = array<i64: 1, 32, 256>}, {transform_indices = @transform_1, window_bounds = array<i64: 1, 64, 256>}, {pipeline_mode = #tpu.pipeline_mode<synchronous>, transform_indices = @transform_2, window_bounds = array<i64: 32, 64>}, {pipeline_mode = #tpu.pipeline_mode<synchronous>, transform_indices = @transform_3, window_bounds = array<i64: 32, 32>}, {pipeline_mode = #tpu.pipeline_mode<synchronous>, transform_indices = @transform_4, window_bounds = array<i64: 32, 11>}, {transform_indices = @transform_5, window_bounds = array<i64: 1, 32, 256>}]} {
    %c0 = arith.constant 0 : index
    %c0_0 = arith.constant 0 : index
    %0 = vector.load %arg5[%c0, %c0_0] : memref<32x11xf32, #tpu.memory_space<vmem>>, vector<32x11xf32>
    %1 = vector.extract_strided_slice %0 {offsets = [0, 9], sizes = [32, 1], strides = [1, 1]} : vector<32x11xf32> to vector<32x1xf32>
    %2 = vector.extract_strided_slice %0 {offsets = [0, 10], sizes = [32, 1], strides = [1, 1]} : vector<32x11xf32> to vector<32x1xf32>
    %c0_1 = arith.constant 0 : index
    %c0_2 = arith.constant 0 : index
    %3 = vector.load %arg3[%c0_1, %c0_2] : memref<32x64xbf16, #tpu.memory_space<vmem>>, vector<32x64xbf16>
    %c0_3 = arith.constant 0 : index
    %c0_4 = arith.constant 0 : index
    %c0_5 = arith.constant 0 : index
    %4 = vector.load %arg2[%c0_3, %c0_4, %c0_5] : memref<1x64x256xf32, #tpu.memory_space<vmem>>, vector<1x64x256xf32>
    %5 = vector.shape_cast %4 : vector<1x64x256xf32> to vector<64x256xf32>
    %6 = arith.truncf %5 : vector<64x256xf32> to vector<64x256xbf16>
    %cst = arith.constant dense<0.000000e+00> : vector<32x256xf32>
    %7 = tpu.matmul %3, %6, %cst {dimension_numbers = #tpu.dot_dimension_numbers<[1], [0], [0], [1], [0, 0, 1, 1], [], []>} : vector<32x64xbf16>, vector<64x256xbf16>, vector<32x256xf32> -> vector<32x256xf32>
    %8 = vector.broadcast %1 : vector<32x1xf32> to vector<32x256xf32>
    %9 = arith.addf %7, %8 : vector<32x256xf32>
    %cst_6 = arith.constant 0.000000e+00 : f32
    %10 = vector.broadcast %cst_6 : f32 to vector<32x256xf32>
    %11 = arith.cmpf ogt, %9, %10 : vector<32x256xf32>
    %cst_7 = arith.constant 2.000000e-01 : f32
    %12 = vector.broadcast %cst_7 : f32 to vector<32x256xf32>
    %13 = arith.mulf %12, %9 : vector<32x256xf32>
    %14 = arith.select %11, %9, %13 : vector<32x256xi1>, vector<32x256xf32>
    %c0_8 = arith.constant 0 : index
    %c0_9 = arith.constant 0 : index
    %c0_10 = arith.constant 0 : index
    %15 = vector.load %arg1[%c0_8, %c0_9, %c0_10] : memref<1x32x256xf32, #tpu.memory_space<vmem>>, vector<1x32x256xf32>
    %16 = vector.shape_cast %15 : vector<1x32x256xf32> to vector<32x256xf32>
    %17 = arith.addf %16, %14 : vector<32x256xf32>
    %18 = tpu.iota {dimensions = array<i32: 1>} : vector<1x256xi32>
    %c15_i32 = arith.constant 15 : i32
    %19 = vector.broadcast %c15_i32 : i32 to vector<1x256xi32>
    %20 = arith.andi %18, %19 : vector<1x256xi32>
    %c1_i32 = arith.constant 1 : i32
    %21 = vector.broadcast %c1_i32 : i32 to vector<1x256xi32>
    %22 = arith.cmpi sge, %20, %21 : vector<1x256xi32>
    %c14_i32 = arith.constant 14 : i32
    %23 = vector.broadcast %c14_i32 : i32 to vector<1x256xi32>
    %24 = arith.cmpi sle, %20, %23 : vector<1x256xi32>
    %c16_i32 = arith.constant 16 : i32
    %25 = vector.broadcast %c16_i32 : i32 to vector<1x256xi32>
    %26 = arith.cmpi sge, %18, %25 : vector<1x256xi32>
    %c240_i32 = arith.constant 240 : i32
    %27 = vector.broadcast %c240_i32 : i32 to vector<1x256xi32>
    %28 = arith.cmpi slt, %18, %27 : vector<1x256xi32>
    %c1_i32_11 = arith.constant 1 : i32
    %29 = tpu.dynamic_rotate %17 by %c1_i32_11 dim 1 : vector<32x256xf32>, i32 -> vector<32x256xf32>
    %cst_12 = arith.constant 0.000000e+00 : f32
    %30 = vector.shape_cast %22 : vector<1x256xi1> to vector<1x256xi1>
    %31 = vector.broadcast %30 : vector<1x256xi1> to vector<32x256xi1>
    %32 = vector.broadcast %cst_12 : f32 to vector<32x256xf32>
    %33 = arith.select %31, %29, %32 : vector<32x256xi1>, vector<32x256xf32>
    %c255_i32 = arith.constant 255 : i32
    %34 = tpu.dynamic_rotate %17 by %c255_i32 dim 1 : vector<32x256xf32>, i32 -> vector<32x256xf32>
    %cst_13 = arith.constant 0.000000e+00 : f32
    %35 = vector.shape_cast %24 : vector<1x256xi1> to vector<1x256xi1>
    %36 = vector.broadcast %35 : vector<1x256xi1> to vector<32x256xi1>
    %37 = vector.broadcast %cst_13 : f32 to vector<32x256xf32>
    %38 = arith.select %36, %34, %37 : vector<32x256xi1>, vector<32x256xf32>
    %39 = vector.extract_strided_slice %0 {offsets = [0, 0], sizes = [32, 1], strides = [1, 1]} : vector<32x11xf32> to vector<32x1xf32>
    %40 = vector.broadcast %39 : vector<32x1xf32> to vector<32x256xf32>
    %41 = arith.mulf %40, %33 : vector<32x256xf32>
    %42 = vector.extract_strided_slice %0 {offsets = [0, 1], sizes = [32, 1], strides = [1, 1]} : vector<32x11xf32> to vector<32x1xf32>
    %43 = vector.broadcast %42 : vector<32x1xf32> to vector<32x256xf32>
    %44 = arith.mulf %43, %17 : vector<32x256xf32>
    %45 = arith.addf %41, %44 : vector<32x256xf32>
    %46 = vector.extract_strided_slice %0 {offsets = [0, 2], sizes = [32, 1], strides = [1, 1]} : vector<32x11xf32> to vector<32x1xf32>
    %47 = vector.broadcast %46 : vector<32x1xf32> to vector<32x256xf32>
    %48 = arith.mulf %47, %38 : vector<32x256xf32>
    %49 = arith.addf %45, %48 : vector<32x256xf32>
    %50 = vector.extract_strided_slice %0 {offsets = [0, 3], sizes = [32, 1], strides = [1, 1]} : vector<32x11xf32> to vector<32x1xf32>
    %51 = vector.broadcast %50 : vector<32x1xf32> to vector<32x256xf32>
    %52 = arith.mulf %51, %33 : vector<32x256xf32>
    %53 = vector.extract_strided_slice %0 {offsets = [0, 4], sizes = [32, 1], strides = [1, 1]} : vector<32x11xf32> to vector<32x1xf32>
    %54 = vector.broadcast %53 : vector<32x1xf32> to vector<32x256xf32>
    %55 = arith.mulf %54, %17 : vector<32x256xf32>
    %56 = arith.addf %52, %55 : vector<32x256xf32>
    %57 = vector.extract_strided_slice %0 {offsets = [0, 5], sizes = [32, 1], strides = [1, 1]} : vector<32x11xf32> to vector<32x1xf32>
    %58 = vector.broadcast %57 : vector<32x1xf32> to vector<32x256xf32>
    %59 = arith.mulf %58, %38 : vector<32x256xf32>
    %60 = arith.addf %56, %59 : vector<32x256xf32>
    %61 = vector.extract_strided_slice %0 {offsets = [0, 6], sizes = [32, 1], strides = [1, 1]} : vector<32x11xf32> to vector<32x1xf32>
    %62 = vector.broadcast %61 : vector<32x1xf32> to vector<32x256xf32>
    %63 = arith.mulf %62, %33 : vector<32x256xf32>
    %64 = vector.extract_strided_slice %0 {offsets = [0, 7], sizes = [32, 1], strides = [1, 1]} : vector<32x11xf32> to vector<32x1xf32>
    %65 = vector.broadcast %64 : vector<32x1xf32> to vector<32x256xf32>
    %66 = arith.mulf %65, %17 : vector<32x256xf32>
    %67 = arith.addf %63, %66 : vector<32x256xf32>
    %68 = vector.extract_strided_slice %0 {offsets = [0, 8], sizes = [32, 1], strides = [1, 1]} : vector<32x11xf32> to vector<32x1xf32>
    %69 = vector.broadcast %68 : vector<32x1xf32> to vector<32x256xf32>
    %70 = arith.mulf %69, %38 : vector<32x256xf32>
    %71 = arith.addf %67, %70 : vector<32x256xf32>
    %c16_i32_14 = arith.constant 16 : i32
    %72 = tpu.dynamic_rotate %49 by %c16_i32_14 dim 1 : vector<32x256xf32>, i32 -> vector<32x256xf32>
    %cst_15 = arith.constant 0.000000e+00 : f32
    %73 = vector.shape_cast %26 : vector<1x256xi1> to vector<1x256xi1>
    %74 = vector.broadcast %73 : vector<1x256xi1> to vector<32x256xi1>
    %75 = vector.broadcast %cst_15 : f32 to vector<32x256xf32>
    %76 = arith.select %74, %72, %75 : vector<32x256xi1>, vector<32x256xf32>
    %77 = arith.addf %60, %76 : vector<32x256xf32>
    %c240_i32_16 = arith.constant 240 : i32
    %78 = tpu.dynamic_rotate %71 by %c240_i32_16 dim 1 : vector<32x256xf32>, i32 -> vector<32x256xf32>
    %cst_17 = arith.constant 0.000000e+00 : f32
    %79 = vector.shape_cast %28 : vector<1x256xi1> to vector<1x256xi1>
    %80 = vector.broadcast %79 : vector<1x256xi1> to vector<32x256xi1>
    %81 = vector.broadcast %cst_17 : f32 to vector<32x256xf32>
    %82 = arith.select %80, %78, %81 : vector<32x256xi1>, vector<32x256xf32>
    %83 = arith.addf %77, %82 : vector<32x256xf32>
    %c0_18 = arith.constant 0 : index
    %c0_19 = arith.constant 0 : index
    %84 = vector.load %arg4[%c0_18, %c0_19] : memref<32x32xbf16, #tpu.memory_space<vmem>>, vector<32x32xbf16>
    %85 = arith.truncf %83 : vector<32x256xf32> to vector<32x256xbf16>
    %cst_20 = arith.constant dense<0.000000e+00> : vector<32x256xf32>
    %86 = tpu.matmul %84, %85, %cst_20 {dimension_numbers = #tpu.dot_dimension_numbers<[1], [0], [0], [1], [0, 0, 1, 1], [], []>} : vector<32x32xbf16>, vector<32x256xbf16>, vector<32x256xf32> -> vector<32x256xf32>
    %87 = vector.broadcast %2 : vector<32x1xf32> to vector<32x256xf32>
    %88 = arith.addf %86, %87 : vector<32x256xf32>
    %cst_21 = arith.constant 0.000000e+00 : f32
    %89 = vector.broadcast %cst_21 : f32 to vector<32x256xf32>
    %90 = arith.cmpf ogt, %88, %89 : vector<32x256xf32>
    %cst_22 = arith.constant 2.000000e-01 : f32
    %91 = vector.broadcast %cst_22 : f32 to vector<32x256xf32>
    %92 = arith.mulf %91, %88 : vector<32x256xf32>
    %93 = arith.select %90, %88, %92 : vector<32x256xi1>, vector<32x256xf32>
    %c0_23 = arith.constant 0 : index
    %c0_24 = arith.constant 0 : index
    %c0_25 = arith.constant 0 : index
    %94 = vector.load %arg6[%c0_23, %c0_24, %c0_25] : memref<1x32x256xf32, #tpu.memory_space<vmem>>, vector<1x32x256xf32>
    %95 = vector.shape_cast %94 : vector<1x32x256xf32> to vector<32x256xf32>
    %96 = vector.shape_cast %93 : vector<32x256xf32> to vector<1x32x256xf32>
    tpu.vector_store %arg6[%c0_23, %c0_24, %c0_25], %96 {strides = array<i32>} : memref<1x32x256xf32, #tpu.memory_space<vmem>>, vector<1x32x256xf32>,
    return
  }
  func.func @transform_0(%arg0: i32) -> (i32, i32, i32) {
    %c0_i32 = arith.constant 0 : i32
    %c0_i32_0 = arith.constant 0 : i32
    %c0_i32_1 = arith.constant 0 : i32
    return %arg0, %c0_i32, %c0_i32_0 : i32, i32, i32
  }
  func.func @transform_1(%arg0: i32) -> (i32, i32, i32) {
    %c0_i32 = arith.constant 0 : i32
    %c0_i32_0 = arith.constant 0 : i32
    %c0_i32_1 = arith.constant 0 : i32
    return %arg0, %c0_i32, %c0_i32_0 : i32, i32, i32
  }
  func.func @transform_2(%arg0: i32) -> (i32, i32) {
    %c0_i32 = arith.constant 0 : i32
    %c0_i32_0 = arith.constant 0 : i32
    %c0_i32_1 = arith.constant 0 : i32
    return %c0_i32, %c0_i32_0 : i32, i32
  }
  func.func @transform_3(%arg0: i32) -> (i32, i32) {
    %c0_i32 = arith.constant 0 : i32
    %c0_i32_0 = arith.constant 0 : i32
    %c0_i32_1 = arith.constant 0 : i32
    return %c0_i32, %c0_i32_0 : i32, i32
  }
  func.func @transform_4(%arg0: i32) -> (i32, i32) {
    %c0_i32 = arith.constant 0 : i32
    %c0_i32_0 = arith.constant 0 : i32
    %c0_i32_1 = arith.constant 0 : i32
    return %c0_i32, %c0_i32_0 : i32, i32
  }
  func.func @transform_5(%arg0: i32) -> (i32, i32, i32) {
    %c0_i32 = arith.constant 0 : i32
    %c0_i32_0 = arith.constant 0 : i32
    %c0_i32_1 = arith.constant 0 : i32
    return %arg0, %c0_i32, %c0_i32_0 : i32, i32, i32
  }
}

</mosaic_0001>

<bundles_post_ra>
// kernel: tpu_custom_call.1
= control target key start
LH: loop header
LB: loop body
LE: loop exit
PB: predicated region body
PF: predicated region fallthrough
CT: control target
= control target key end

     0   :  { %10 = vsyncpa [#allocation3], 0  ;;  %s2208_s0 = inlined_call_operand.hbm [shape: f32[2,32,256], index: 0, kind: input, shape index: {}]   ;;  %s2209_s1 = inlined_call_operand.hbm [shape: f32[2,64,256], index: 1, kind: input, shape index: {}]   ;;  %s2210_s2 = inlined_call_operand.vmem [shape: bf16[32,64], index: 2, kind: input, shape index: {}]   ;;  %s2211_s3 = inlined_call_operand.vmem [shape: bf16[32,32], index: 3, kind: input, shape index: {}]   ;;  %s2212_s4 = inlined_call_operand.vmem [shape: f32[32,11], index: 4, kind: input, shape index: {}]   ;;  %s2213_s5 = inlined_call_operand.hbm [shape: f32[2,32,256], index: 5, kind: output, shape index: {}]  }
   0x1   :  { %12 = vsyncpa [#allocation3 + $0x1], 0 }
   0x2   :  { %13 = vsyncpa [#allocation6], 0 }
   0x3   :  { %15 = vsyncpa [#allocation6 + $0x1], 0 }
   0x4   :  { %16 = vsyncpa [#allocation4], 0 }
   0x5   :  { %18 = vsyncpa [#allocation4 + $0x1], 0  ;;  %s1432_s18 = smov 0   ;;  %s1434_s19 = smov 0  }
   0x6   :  { %s1436_s20 = smov 0   ;;  %s1438_s21 = smov 0  }
   0x7 LB: > { %s1453_s22 = sadd.s32 4294967295, %s1379_s21   ;;  %s1123_s23 = sadd.s32 4294967294, %s1379_s21   ;;  %s1379_s21 = sphi %s1438_s21, %s2293_s21   ;;  %s1375_s20 = sphi %s1436_s20, %s2292_s20   ;;  %s1371_s19 = sphi %s1434_s19, %s2291_s19   ;;  %s1367_s18 = sphi %s1432_s18, %s2290_s18  }
   0x8   : > { %s1457_s24 = sadd.s32 1, %s1379_s21   ;;  %s31_s25 = sadd.s32 1, %s1375_s20 }
   0x9   : > { %s28_s26 = ssub.s32 %s1379_s21, %s1457_s24  ;;  %p38_p0 = scmp.ne.s32.totalorder %s1375_s20, %s1371_s19 }
   0xa   : > { %p29_p1 = scmp.eq.s32.totalorder %s28_s26, 0  ;;  %p39_p2 = scmp.eq.s32.totalorder %s1379_s21, 0 }
   0xb   : > { %p44_p3 = scmp.ne.s32.totalorder %s1371_s19, %s1367_s18  ;;  %p45_p4 = scmp.eq.s32.totalorder %s1453_s22, 0 }
   0xc   : > { %s1469_s27 = scalar_select %p29_p1, %s1375_s20, %s31_s25  }
   0xd   : > { %p1471_p5 = por %p39_p2, %p38_p0  ;;  %p1475_p6 = por %p45_p4, %p44_p3 }
   0xe   : > { %p157_p7 = scmp.eq.s32.totalorder %s1453_s22, 1  ;;  %p163_p8 = scmp.eq.s32.totalorder %s1123_s23, 1 }
   0xf   : > { %s2239_s29 = scalar_select %p1475_p6, 1, 0 }
  0x10   : > { %p1169_p10 = scmp.lt.s32.totalorder %s1379_s21, 2  ;;  %p1482_p11 = por %p157_p7, %p38_p0 }
  0x11   : > { %p1486_p12 = por %p163_p8, %p44_p3  ;;  %s1491_s7 = sand.u32 1, %s1375_s20  }
  0x12   : > { %s2240_s30 = scalar_select %p1482_p11, 1, 0 }
  0x13   : > { %s2241_s6 = scalar_select %p1486_p12, 1, 0 }
  0x14   : > { %s1149_s8 = sshll.u32 %s1379_s21, 10  ;;  %s1126_s9 = sshll.u32 %s1491_s7, 6 }
  0x15   : > { %s1498_s12 = scalar_lea.hbm %s2208_s0, %s1149_s8  ;;  %s196_s13 = scalar_lea.vmem [#allocation2], %s1126_s9 }
  0x16   : > { %s203_s14 = sshll.u32 %s196_s13, 4  ;;  %p1502_p13 = pnand %p1169_p10, %p1471_p5  ;;  %s1506_s14 = int_to_ptr.vmem [resolvable:$true] %s203_s14 }
  0x17   : > { %s193_s16 = scalar_lea.sflag [#allocation3], %s1491_s7  ;;  %s1255_s17 = scalar_lea.hbm %s1498_s12, 1024 }
  0x18   : > { %p1256_p0 = scmp.ne.s32.totalorder %s1498_s12, %s1255_s17  ;;  %p1257_p1 = pneg %p1502_p13 }
  0x19   : > { %s1260_s26 = scalar_lea.hbm %s2208_s0, 2048  ;;  %p1261_p4 = scmp.lt.s32.totalorder %s1498_s12, %s2208_s0 }
  0x1a   : > { %p1258_p2 = pnand %p1257_p1, %p1256_p0  ;;  %p1262_p5 = scmp.lt.s32.totalorder %s1260_s26, %s1255_s17 }
  0x1c   : > { %p1259_p3 = pneg %p1258_p2  ;;  %p1263_p7 = por %p1262_p5, %p1261_p4 }
  0x1e   : > { %p1264_p8 = pnand %p1263_p7, %p1259_p3 }
  0x20   : > { %1267 = shalt.err (!%p1264_p8)
}
  0x21   : > { %s1268_s9 = scalar_lea.vmem %s1506_s14, 1024  ;;  %s1381_s10 = smov [#allocation2]  }
  0x22   : > { %p1269_p10 = scmp.ne.s32.totalorder %s1506_s14, %s1268_s9  ;;  %s1273_s11 = sshll.u32 %s1381_s10, 4  ;;  %s1274_s11 = int_to_ptr.vmem [resolvable:$false] %s1273_s11 }
  0x23   : > { %s1275_s13 = scalar_lea.vmem %s1274_s11, 2048  ;;  %p1276_p9 = scmp.lt.s32.totalorder %s1506_s14, %s1274_s11 }
  0x24   : > { %p1271_p0 = pnand %p1269_p10, %p1257_p1  ;;  %p1277_p12 = scmp.lt.s32.totalorder %s1275_s13, %s1268_s9 }
  0x26   : > { %p1272_p2 = pneg %p1271_p0  ;;  %p1278_p11 = por %p1277_p12, %p1276_p9 }
  0x28   : > { %p1279_p4 = pnand %p1278_p11, %p1272_p2 }
  0x2a   : > { %1282 = shalt.err (!%p1279_p4)
}
  0x2b   : > { %s2215_s17 = smov 256   ;;  %s1383_s23 = smov 16  }
  0x2c   : > { %1161 = dma.hbm_to_vmem [thread:$0]  (!%p1502_p13), %s1498_s12, 1024, %s1506_s14, %s193_s16, %s2215_s17, %s2215_s17, %s1383_s23  }
  0x2d   : > { %p1132_p9 = scmp.ge.s32.totalorder %s1379_s21, 1  ;;  %p232_p11 = scmp.lt.s32.totalorder %s1379_s21, 3 }
  0x2e   : > { %s1129_s25 = sshll.u32 %s1491_s7, 7  ;;  %s1150_s28 = sshll.u32 %s1379_s21, 11 }
  0x2f   : > { %p1541_p12 = pnand %p1132_p9, %p232_p11  ;;  %s217_s8 = scalar_lea.vmem [#allocation5], %s1129_s25 }
  0x30   : > { %s224_s9 = sshll.u32 %s217_s8, 4  ;;  %s1549_s13 = scalar_lea.hbm %s2209_s1, %s1150_s28  ;;  %s1551_s9 = int_to_ptr.vmem [resolvable:$true] %s224_s9 }
  0x31   : > { %s214_s12 = scalar_lea.sflag [#allocation6], %s1491_s7  ;;  %s1283_s14 = scalar_lea.hbm %s1549_s13, 2048 }
  0x32   : > { %p1284_p3 = scmp.ne.s32.totalorder %s1549_s13, %s1283_s14  ;;  %s1288_s8 = scalar_lea.hbm %s2209_s1, 4096 }
  0x33   : > { %p1289_p8 = scmp.lt.s32.totalorder %s1549_s13, %s2209_s1  ;;  %p1290_p10 = scmp.lt.s32.totalorder %s1288_s8, %s1283_s14 }
  0x34   : > { %p1286_p5 = pnand %p1284_p3, %p1257_p1 }
  0x35   : > { %p1291_p0 = por %p1290_p10, %p1289_p8 }
  0x36   : > { %p1287_p7 = pneg %p1286_p5 }
  0x38   : > { %p1292_p2 = pnand %p1291_p0, %p1287_p7 }
  0x3a   : > { %1295 = shalt.err (!%p1292_p2)
}
  0x3b   : > { %s1296_s7 = scalar_lea.vmem %s1551_s9, 2048  ;;  %s1384_s28 = smov [#allocation5]  }
  0x3c   : > { %p1297_p4 = scmp.ne.s32.totalorder %s1551_s9, %s1296_s7  ;;  %s1301_s11 = sshll.u32 %s1384_s28, 4  ;;  %s1302_s11 = int_to_ptr.vmem [resolvable:$false] %s1301_s11 }
  0x3d   : > { %s1303_s16 = scalar_lea.vmem %s1302_s11, 4096  ;;  %p1304_p3 = scmp.lt.s32.totalorder %s1551_s9, %s1302_s11 }
  0x3e   : > { %p1299_p9 = pnand %p1297_p4, %p1257_p1  ;;  %p1305_p5 = scmp.lt.s32.totalorder %s1303_s16, %s1296_s7 }
  0x40   : > { %p1300_p11 = pneg %p1299_p9  ;;  %p1306_p6 = por %p1305_p5, %p1304_p3 }
  0x42   : > { %p1307_p8 = pnand %p1306_p6, %p1300_p11 }
  0x44   : > { %1310 = shalt.err (!%p1307_p8)
}
  0x45   : > { %s2244_s17 = smov 256   ;;  %236 = sbr.rel (%p1541_p12) target bundleno = 833 (0x341), region = 40 }
  0x46   : > { %1164 = dma.hbm_to_vmem [thread:$0]  (!%p1502_p13), %s1549_s13, 2048, %s1551_s9, %s214_s12, %s2244_s17, %s2244_s17, %s1383_s23  }
  0x4a   : > { %s1582_s14 = sand.u32 1, %s1371_s19   ;;  %p2245_p6 = scmp.ne.s32.totalorder %s2239_s29, 0 }
  0x4b   : > { %s1133_s25 = sshll.u32 %s1582_s14, 6  ;;  %s239_s8 = scalar_lea.sflag [#allocation3], %s1582_s14 }
  0x4c   : > { %s1588_s15 = scalar_lea.vmem [#allocation2], %s1133_s25 }
  0x4d   : > { %1354 = dma.done.wait (%p2245_p6), %s239_s8, 1024  }
  0x4e   : > { %1356 = vsyncadd (%p2245_p6), %s239_s8, 4294966272  ;;  %s1134_s23 = sshll.u32 %s1582_s14, 7  ;;  %s248_s26 = scalar_lea.sflag [#allocation6], %s1582_s14 }
  0x4f   : > { %s1596_s9 = scalar_lea.vmem [#allocation5], %s1134_s23 }
  0x50   : > { %1358 = dma.done.wait (%p2245_p6), %s248_s26, 2048  }
  0x51   : > { %1360 = vsyncadd (%p2245_p6), %s248_s26, 4294965248  ;;  %v2217_v0 = vmov 0   ;;  %v1386_v1 = vmov 9   ;;  %v305_v2 = vld [vmem:[%s1596_s9 + $0x68] sm:$0xff]  ;;  %v307_v3 = vld [vmem:[%s1596_s9 + $0x78] sm:$0xff]  ;;  %vm346_vm0 = vcmask 523264  }
  0x52   : > { %385 = vmatprep.mubr.bf16.mxu0 %v2217_v0  ;;  %1222 = vset.pattern.permute.xlu1 %v1386_v1  ;;  %v304_v4 = vld [vmem:[%s1596_s9 + $0x60] sm:$0xff]  ;;  %v315_v5 = vpack.c.bf16 %v307_v3, %v305_v2  ;;  %v306_v6 = vld [vmem:[%s1596_s9 + $0x70] sm:$0xff]  ;;  %v301_v7 = vld [vmem:[%s1596_s9 + $0x48] sm:$0xff]  ;;  %v1387_v31 = vmov 1   ;;  %v1388_v32 = vmov 2   ;;  %v1389_v34 = vmov 6  }
  0x53   : > { %1221 = vset.pattern.permute.xlu0 %v1386_v1  ;;  %960 = vmatprep.mubr.bf16.mxu1 %v2217_v0  ;;  %v303_v8 = vld [vmem:[%s1596_s9 + $0x58] sm:$0xff]  ;;  %v314_v9 = vpack.c.bf16 %v306_v6, %v304_v4  ;;  %v300_v11 = vld [vmem:[%s1596_s9 + $0x40] sm:$0xff]  ;;  %v302_v12 = vld [vmem:[%s1596_s9 + $0x50] sm:$0xff]  ;;  %v1390_v35 = vmov 7   ;;  %v1391_v36 = vmov 8   ;;  %v1392_v37 = vmov 3  }
  0x54   : > { %v313_v10 = vpack.c.bf16 %v303_v8, %v301_v7  ;;  %v297_v13 = vld [vmem:[%s1596_s9 + $0x28] sm:$0xff]  ;;  %361 = vmatprep.subr.bf16.mxu0 %v315_v5  ;;  %v299_v14 = vld [vmem:[%s1596_s9 + $0x38] sm:$0xff]  ;;  %v312_v15 = vpack.c.bf16 %v302_v12, %v300_v11  ;;  %v296_v16 = vld [vmem:[%s1596_s9 + $0x20] sm:$0xff]  ;;  %s1394_s29 = smov 1   ;;  %s1398_s13 = smov 112  }
  0x55   : > { %362 = vmatpush1.bf16.msra.mxu0 %v314_v9  ;;  %v298_v17 = vld [vmem:[%s1596_s9 + $0x30] sm:$0xff]  ;;  %v311_v18 = vpack.c.bf16 %v299_v14, %v297_v13  ;;  %v293_v19 = vld [vmem:[%s1596_s9 + $0x8] sm:$0xff]  ;;  %v295_v20 = vld [vmem:[%s1596_s9 + $0x18] sm:$0xff]  ;;  %s2147_s11 = scalar_lea.vmem [#allocation7], %s1133_s25  ;;  %s1151_s16 = sshll.u32 %s1453_s22, 10 }
  0x56   : > { %363 = vmatprep.subr.bf16.mxu0 %v313_v10  ;;  %v292_v21 = vld [vmem:[%s1596_s9] sm:$0xff]  ;;  %v294_v22 = vld [vmem:[%s1596_s9 + $0x10] sm:$0xff]  ;;  %v310_v24 = vpack.c.bf16 %v298_v17, %v296_v16  ;;  %v1629_v25 = vld [vmem:[%s2212_s4 + $0x8] sm:$0xff]  ;;  %v309_v27 = vpack.c.bf16 %v295_v20, %v293_v19  ;;  %s1393_s9 = smov 127   ;;  %s1027_s25 = sshll.u32 %s2147_s11, 4  ;;  %s2157_s25 = int_to_ptr.vmem [resolvable:$true] %s1027_s25 }
  0x57   : > { %v1623_v23 = vld [vmem:[%s2212_s4] sm:$0xff]  ;;  %2247 = vst [vmem:[#allocation12_spill] sm:$0xff] %v1629_v25  ;;  %v1634_v26 = vld [vmem:[%s2212_s4 + $0x10] sm:$0xff]  ;;  %v308_v28 = vpack.c.bf16 %v294_v22, %v292_v21  ;;  %v1641_v29 = vld [vmem:[%s2212_s4 + $0x18] sm:$0xff]  ;;  %s2163_s23 = scalar_lea.hbm %s2213_s5, %s1151_s16  ;;  %s1014_s26 = scalar_lea.sflag [#allocation4], %s1582_s14 }
  0x58   : > { %2246 = vst [vmem:[#allocation11_spill] sm:$0xff] %v1623_v23  ;;  %318 = vperm.xlu1 %1222, %v1623_v23   ;;  %2248 = vst [vmem:[#allocation13_spill] sm:$0xff] %v1634_v26  ;;  %328 = vperm.xlu0 %1221, %v1634_v26   ;;  %v1251_v30 = vld [vmem:[%s2210_s2] sm:$0xff]   ;;  %v1252_v33 = vld [vmem:[%s2210_s2 + $0x8] sm:$0xff]   ;;  %p2287_p1 = scmp.ne.s32.totalorder %s2240_s30, 0  ;;  %s1400_s22 = smov [#allocation7]  }
  0x59   : > { %364 = vmatpush1.bf16.msra.mxu0 %v312_v15  ;;  %2249 = vst [vmem:[#allocation14_spill] sm:$0xff] %v1641_v29  ;;  %v430_v43 = vld [vmem:[%s1588_s15] sm:$0xff]  ;;  %v431_v54 = vld [vmem:[%s1588_s15 + $0x8] sm:$0xff]  ;;  %v432_v56 = vld [vmem:[%s1588_s15 + $0x10] sm:$0xff] }
  0x5a   : > { %365 = vmatprep.subr.bf16.mxu0 %v311_v18  ;;  %v433_v3 = vld [vmem:[%s1588_s15 + $0x18] sm:$0xff]  ;;  %v434_v11 = vld [vmem:[%s1588_s15 + $0x20] sm:$0xff]  ;;  %v435_v17 = vld [vmem:[%s1588_s15 + $0x28] sm:$0xff] }
  0x5b   : > { %v436_v19 = vld [vmem:[%s1588_s15 + $0x30] sm:$0xff] }
  0x5c   : > { %323 = vperm.xlu1 %1222, %v1629_v25   ;;  %333 = vperm.xlu0 %1221, %v1641_v29  }
  0x5d   : > { %366 = vmatpush1.bf16.msra.mxu0 %v310_v24 }
  0x5e   : > { %367 = vmatprep.subr.bf16.mxu0 %v309_v27 }
  0x60   : > { %1223 = vset.pattern.permute.xlu1 %v2217_v0  ;;  %1225 = vset.pattern.permute.xlu0 %v1387_v31 }
  0x61   : > { %368 = vmatpush1.bf16.msra.mxu0 %v308_v28  ;;  %546 = vperm.xlu1 %1223, %v1641_v29   ;;  %v437_v28 = vld [vmem:[%s1588_s15 + $0x38] sm:$0xff]  ;;  %s1397_s15 = smov 16  }
  0x62   : > { %570 = vperm.xlu0 %1225, %v1641_v29  }
  0x64   : > { %1138 = vmatmul.mubr.msk.bf16.vlgmr.msra.gmra.mxu0 %vm346_vm0, %v1251_v30 }
  0x65   : > { %395 = vmatprep.mubr.bf16.mxu0 %v2217_v0  ;;  %1224 = vset.pattern.permute.xlu1 %v1387_v31 }
  0x66   : > { %566 = vperm.xlu1 %1224, %v1634_v26   ;;  %1229 = vset.pattern.permute.xlu0 %v1388_v32 }
  0x67   : > { %602 = vperm.xlu0 %1229, %v1641_v29  }
  0x6a   : > { %1226 = vset.pattern.permute.xlu1 %v1389_v34 }
  0x6b   : > { %718 = vperm.xlu1 %1226, %v1634_v26   ;;  %1230 = vset.pattern.permute.xlu0 %v2217_v0 }
  0x6c   : > { %1139 = vmatmul.mubr.msk.bf16.gmra.mxu0 %vm346_vm0, %v1252_v33  ;;  %542 = vperm.xlu0 %1230, %v1634_v26   ;;  %v1395_v33 = vmov 5  }
  0x6f   : > { %722 = vperm.xlu1 %1226, %v1641_v29  }
  0x70   : > { %538 = vperm.xlu0 %1230, %v1629_v25  }
  0x73   : > { %1227 = vset.pattern.permute.xlu1 %v1390_v35 }
  0x74   : > { %746 = vperm.xlu1 %1227, %v1641_v29   ;;  %1234 = vset.pattern.permute.xlu0 %v1389_v34 }
  0x75   : > { %710 = vperm.xlu0 %1234, %v1623_v23  }
  0x78   : > { %1228 = vset.pattern.permute.xlu1 %v1388_v32 }
  0x79   : > { %598 = vperm.xlu1 %1228, %v1634_v26   ;;  %1235 = vset.pattern.permute.xlu0 %v1390_v35 }
  0x7a   : > { %742 = vperm.xlu0 %1235, %v1634_v26  }
  0x7d   : > { %1231 = vset.pattern.permute.xlu1 %v1391_v36 }
  0x7e   : > { %778 = vperm.xlu1 %1231, %v1641_v29   ;;  %738 = vperm.xlu0 %1235, %v1629_v25  }
  0x82   : > { %1232 = vset.pattern.permute.xlu1 %v2217_v0  ;;  %1238 = vset.pattern.permute.xlu0 %v1391_v36 }
  0x83   : > { %534 = vperm.xlu1 %1232, %v1623_v23   ;;  %774 = vperm.xlu0 %1238, %v1634_v26  }
  0x87   : > { %1233 = vset.pattern.permute.xlu1 %v1387_v31  ;;  %766 = vperm.xlu0 %1238, %v1623_v23  }
  0x88   : > { %558 = vperm.xlu1 %1233, %v1623_v23  }
  0x8b   : > { %1242 = vset.pattern.permute.xlu0 %v1392_v37 }
  0x8c   : > { %562 = vperm.xlu1 %1233, %v1629_v25  }
  0x90   : > { %1236 = vset.pattern.permute.xlu1 %v1389_v34 }
  0x91   : > { %714 = vperm.xlu1 %1236, %v1629_v25  }
  0x95   : > { %1237 = vset.pattern.permute.xlu1 %v1390_v35  ;;  %v1396_v35 = vmov 4  }
  0x96   : > { %734 = vperm.xlu1 %1237, %v1623_v23  }
  0x9a   : > { %1239 = vset.pattern.permute.xlu1 %v1388_v32 }
  0x9b   : > { %590 = vperm.xlu1 %1239, %v1623_v23  }
  0x9f   : > { %594 = vperm.xlu1 %1239, %v1629_v25  }
  0xa3   : > { %1240 = vset.pattern.permute.xlu1 %v1391_v36 }
  0xa4   : > { %770 = vperm.xlu1 %1240, %v1629_v25  }
  0xa8   : > { %1241 = vset.pattern.permute.xlu1 %v1392_v37 }
  0xd3   : > { %v319_v38 = vpop.permute.xlu1 %318  ;;  %v329_v50 = vpop.permute.xlu0 %328 }
  0xd7   : > { %v324_v45 = vpop.permute.xlu1 %323  ;;  %v334_v6 = vpop.permute.xlu0 %333 }
  0xdc   : > { %v1734_v31 = vpop.permute.xlu1 %546 }
  0xe1   : > { %v1742_v32 = vpop.permute.xlu1 %566 }
  0xe2   : > { %2253 = vst [vmem:[#allocation18_spill] sm:$0xff] %v1742_v32 }
  0xe6   : > { %v1746_v34 = vpop.permute.xlu1 %718 }
  0xe7   : > { %2254 = vst [vmem:[#allocation19_spill] sm:$0xff] %v1746_v34 }
  0xea   : > { %v1751_v36 = vpop.permute.xlu1 %722 }
 0x124   : > { %v387_v39 = vpop.f32.mrf.mxu0 }
 0x125   : > { %v388_v40 = vadd.f32 %v387_v39, %v319_v38 }
 0x126   : > { %v389_v41 = vpop.f32.mrf.mxu0 }
 0x127   : > { %vm406_vm1 = vcmp.gt.f32.partialorder %v388_v40, 0.0  ;;  %v414_v42 = vmul.f32 0.2, %v388_v40  ;;  %v390_v44 = vadd.f32 %v389_v41, %v319_v38  ;;  %v1754_v38 = vpop.permute.xlu1 %746 }
 0x128   : > { %v391_v46 = vpop.f32.mrf.mxu0 }
 0x129   : > { %v422_v47 = vsel %vm406_vm1, %v388_v40, %v414_v42  ;;  %vm407_vm2 = vcmp.gt.f32.partialorder %v390_v44, 0.0  ;;  %v415_v48 = vmul.f32 0.2, %v390_v44  ;;  %v392_v49 = vadd.f32 %v391_v46, %v324_v45  ;;  %v1761_v40 = vpop.permute.xlu0 %570 }
 0x12a   : > { %v1683_v51 = vadd.f32 %v430_v43, %v422_v47  ;;  %v393_v52 = vpop.f32.mrf.mxu0 }
 0x12b   : > { %v423_v53 = vsel %vm407_vm2, %v390_v44, %v415_v48  ;;  %vm408_vm3 = vcmp.gt.f32.partialorder %v392_v49, 0.0  ;;  %v416_v55 = vmul.f32 0.2, %v392_v49  ;;  %v394_v57 = vadd.f32 %v393_v52, %v324_v45  ;;  %v1758_v39 = vpop.permute.xlu1 %598 }
 0x12c   : > { %v397_v58 = vpop.f32.mrf.mxu0  ;;  %496 = vrot.lane.b32.xlu1 %v1683_v51, %s1393_s9  ;;  %459 = vrot.lane.b32.xlu0 %v1683_v51, %s1394_s29  ;;  %v1691_v62 = vadd.f32 %v431_v54, %v423_v53  ;;  %2255 = vst [vmem:[#allocation20_spill] sm:$0xff] %v1758_v39 }
 0x12d   : > { %v424_v59 = vsel %vm408_vm3, %v392_v49, %v416_v55  ;;  %vm409_vm4 = vcmp.gt.f32.partialorder %v394_v57, 0.0  ;;  %v417_v60 = vmul.f32 0.2, %v394_v57  ;;  %v398_v61 = vadd.f32 %v397_v58, %v329_v50  ;;  %v1766_v42 = vpop.permute.xlu0 %602 }
 0x12e   : > { %2250 = vst [vmem:[#allocation15_spill] sm:$0xff] %v1691_v62  ;;  %v1693_v63 = vadd.f32 %v432_v56, %v424_v59  ;;  %v399_v1 = vpop.f32.mrf.mxu0  ;;  %vm921_vm3 = vcmask 261120  }
 0x12f   : > { %v425_v2 = vsel %vm409_vm4, %v394_v57, %v417_v60  ;;  %v418_v4 = vmul.f32 0.2, %v398_v61  ;;  %v400_v5 = vadd.f32 %v399_v1, %v329_v50  ;;  %vm410_vm5 = vcmp.gt.f32.partialorder %v398_v61, 0.0  ;;  %v1763_v41 = vpop.permute.xlu1 %778 }
 0x130   : > { %2251 = vst [vmem:[#allocation16_spill] sm:$0xff] %v1693_v63  ;;  %v401_v7 = vpop.f32.mrf.mxu0  ;;  %467 = vrot.lane.b32.xlu0 %v1691_v62, %s1394_s29  ;;  %461 = vrot.lane.b32.xlu1 %v1693_v63, %s1394_s29  ;;  %v1700_v9 = vadd.f32 %v433_v3, %v425_v2  ;;  %v446_v60 = vlaneseq }
 0x131   : > { %v402_v8 = vadd.f32 %v401_v7, %v334_v6  ;;  %v426_v10 = vsel %vm410_vm5, %v398_v61, %v418_v4  ;;  %v419_v12 = vmul.f32 0.2, %v400_v5  ;;  %vm411_vm6 = vcmp.gt.f32.partialorder %v400_v5, 0.0 }
 0x132   : > { %v403_v14 = vpop.f32.mrf.mxu0  ;;  %v1707_v15 = vadd.f32 %v434_v11, %v426_v10  ;;  %v1797_v2 = vand.u32 127, %v446_v60 }
 0x133   : > { %v420_v13 = vmul.f32 0.2, %v402_v8  ;;  %vm412_vm7 = vcmp.gt.f32.partialorder %v402_v8, 0.0  ;;  %v427_v16 = vsel %vm411_vm6, %v400_v5, %v419_v12  ;;  %v404_v20 = vadd.f32 %v403_v14, %v334_v6  ;;  %v1769_v43 = vpop.permute.xlu1 %534 }
 0x134   : > { %498 = vrot.lane.b32.xlu0 %v1693_v63, %s1393_s9  ;;  %469 = vrot.lane.b32.xlu1 %v1700_v9, %s1394_s29  ;;  %2252 = vst [vmem:[#allocation17_spill] sm:$0xff] %v1707_v15  ;;  %v1715_v21 = vadd.f32 %v435_v17, %v427_v16  ;;  %v1800_v5 = vadd.s32 128, %v1797_v2  ;;  %vm475_vm9 = vcmp.lt.s32.totalorder %v1797_v2, 1  ;;  %vm512_vm12 = vcmp.lt.s32.totalorder %v1797_v2, 127 }
 0x135   : > { %v428_v18 = vsel %vm412_vm7, %v402_v8, %v420_v13  ;;  %v421_v24 = vmul.f32 0.2, %v404_v20  ;;  %vm413_vm8 = vcmp.gt.f32.partialorder %v404_v20, 0.0  ;;  %v449_v8 = vand.u32 15, %v1797_v2 }
 0x136   : > { %v1717_v22 = vadd.f32 %v436_v19, %v428_v18  ;;  %2257 = vst [vmem:[#allocation22_spill] sm:$0xff] %v1800_v5  ;;  %v450_v10 = vand.u32 15, %v1800_v5  ;;  %vm813_vm15 = vcmp.lt.s32.totalorder %v1797_v2, 16  ;;  %vm858_vm0 = vcmp.lt.s32.totalorder %v1797_v2, 112 }
 0x137   : > { %v429_v27 = vsel %vm413_vm8, %v404_v20, %v421_v24  ;;  %v1773_v44 = vpop.permute.xlu1 %558  ;;  %vm1813_vm10 = vcmp.ge.s32.totalorder %v449_v8, 1  ;;  %vm1855_vm13 = vcmp.le.s32.totalorder %v449_v8, 14  ;;  %vm455_vm1 = vcmp.ge.s32.totalorder %v1797_v2, 16 }
 0x138   : > { %500 = vrot.lane.b32.xlu0 %v1707_v15, %s1393_s9  ;;  %463 = vrot.lane.b32.xlu1 %v1707_v15, %s1394_s29  ;;  %v1728_v30 = vadd.f32 %v437_v28, %v429_v27  ;;  %vm1819_vm11 = vcmp.ge.s32.totalorder %v450_v10, 1  ;;  %vm1863_vm14 = vcmp.le.s32.totalorder %v450_v10, 14  ;;  %v2286_v2 = vmov 0  }
 0x13b   : > { %v1775_v46 = vpop.permute.xlu1 %562 }
 0x13c   : > { %471 = vrot.lane.b32.xlu0 %v1715_v21, %s1394_s29  ;;  %465 = vrot.lane.b32.xlu1 %v1717_v22, %s1394_s29 }
 0x13f   : > { %v1779_v48 = vpop.permute.xlu1 %714 }
 0x140   : > { %508 = vrot.lane.b32.xlu0 %v1715_v21, %s1393_s9  ;;  %502 = vrot.lane.b32.xlu1 %v1717_v22, %s1393_s9 }
 0x143   : > { %v1783_v50 = vpop.permute.xlu1 %734 }
 0x144   : > { %506 = vrot.lane.b32.xlu0 %v1700_v9, %s1393_s9  ;;  %473 = vrot.lane.b32.xlu1 %v1728_v30, %s1394_s29  ;;  %s1315_s29 = sshll.u32 %s1400_s22, 4  ;;  %s1316_s29 = int_to_ptr.vmem [resolvable:$false] %s1315_s29 }
 0x145   : > { %p1318_p10 = scmp.lt.s32.totalorder %s2157_s25, %s1316_s29 }
 0x147   : > { %v1787_v53 = vpop.permute.xlu1 %590 }
 0x148   : > { %634 = vperm.xlu0 %1242, %v1641_v29   ;;  %510 = vrot.lane.b32.xlu1 %v1728_v30, %s1393_s9 }
 0x14b   : > { %v595_v55 = vpop.permute.xlu1 %594 }
 0x14c   : > { %626 = vperm.xlu0 %1242, %v1629_v25   ;;  %504 = vrot.lane.b32.xlu1 %v1691_v62, %s1393_s9  ;;  %s1311_s9 = scalar_lea.vmem %s2157_s25, 1024 }
 0x14d   : > { %p1312_p13 = scmp.ne.s32.totalorder %s2157_s25, %s1311_s9 }
 0x14f   : > { %v1793_v57 = vpop.permute.xlu1 %770  ;;  %p1313_p12 = pnand %p1312_p13, %p2287_p1 }
 0x150   : > { %1246 = vset.pattern.permute.xlu0 %v1395_v33  ;;  %630 = vperm.xlu1 %1241, %v1634_v26  }
 0x151   : > { %686 = vperm.xlu0 %1246, %v1634_v26   ;;  %p1314_p7 = pneg %p1313_p12 }
 0x154   : > { %1243 = vset.pattern.permute.xlu1 %v1396_v35 }
 0x155   : > { %678 = vperm.xlu0 %1246, %v1623_v23   ;;  %654 = vperm.xlu1 %1243, %v1634_v26  }
 0x159   : > { %658 = vperm.xlu1 %1243, %v1641_v29  }
 0x15d   : > { %1244 = vset.pattern.permute.xlu1 %v1395_v33 }
 0x15e   : > { %690 = vperm.xlu1 %1244, %v1641_v29  }
 0x162   : > { %1245 = vset.pattern.permute.xlu1 %v1392_v37  ;;  %v1771_v37 = vpop.permute.xlu0 %542 }
 0x163   : > { %622 = vperm.xlu1 %1245, %v1623_v23  }
 0x166   : > { %v539_v45 = vpop.permute.xlu0 %538 }
 0x167   : > { %1247 = vset.pattern.permute.xlu1 %v1396_v35  ;;  %v750_v35 = vmul.f32 %v1783_v50, %v1691_v62 }
 0x168   : > { %646 = vperm.xlu1 %1247, %v1623_v23  }
 0x16a   : > { %v1777_v47 = vpop.permute.xlu0 %710 }
 0x16c   : > { %650 = vperm.xlu1 %1247, %v1629_v25  }
 0x16e   : > { %v1781_v49 = vpop.permute.xlu0 %742 }
 0x16f   : > { %2256 = vst [vmem:[#allocation21_spill] sm:$0xff] %v1781_v49 }
 0x170   : > { %1248 = vset.pattern.permute.xlu1 %v1395_v33  ;;  %v573_v33 = vmul.f32 %v1773_v44, %v1683_v51 }
 0x171   : > { %682 = vperm.xlu1 %1248, %v1629_v25  }
 0x172   : > { %v1785_v52 = vpop.permute.xlu0 %738 }
 0x173   : > { %v751_v15 = vmul.f32 %v1785_v52, %v1693_v63 }
 0x176   : > { %v1789_v54 = vpop.permute.xlu0 %774 }
 0x17a   : > { %v1791_v56 = vpop.permute.xlu0 %766 }
 0x19e   : > { %v460_v58 = vpop.permute.xlu0 %459  ;;  %v1795_v59 = vpop.permute.xlu1 %496 }
 0x1a2   : > { %v468_v61 = vpop.permute.xlu0 %467  ;;  %v462_v1 = vpop.permute.xlu1 %461 }
 0x1a3   : > { %v480_v16 = vsel %vm475_vm9, %v468_v61, %v460_v58  ;;  %v476_v18 = vsel %vm475_vm9, %v460_v58, %v468_v61 }
 0x1a4   : > { %v1835_v28 = vsel %vm1813_vm10, %v480_v16, 0.0  ;;  %v1843_v58 = vsel %vm1819_vm11, %v476_v18, 0.0  ;;  %v575_v18 = vmul.f32 %v1775_v46, %v1693_v63 }
 0x1a5   : > { %2263 = vst [vmem:[#allocation24_spill] sm:$0xff] %v1843_v58  ;;  %v549_v0 = vmul.f32 %v1769_v43, %v1835_v28  ;;  %v726_v29 = vmul.f32 %v1777_v47, %v1843_v58 }
 0x1a6   : > { %v499_v3 = vpop.permute.xlu0 %498  ;;  %v470_v4 = vpop.permute.xlu1 %469 }
 0x1a7   : > { %v481_v13 = vsel %vm475_vm9, %v470_v4, %v462_v1  ;;  %v477_v27 = vsel %vm475_vm9, %v462_v1, %v470_v4 }
 0x1a8   : > { %v1827_v19 = vsel %vm1813_vm10, %v481_v13, 0.0  ;;  %v1849_v61 = vsel %vm1819_vm11, %v477_v27, 0.0 }
 0x1a9   : > { %2262 = vst [vmem:[#allocation23_spill] sm:$0xff] %v1827_v19  ;;  %v551_v60 = vmul.f32 %v539_v45, %v1827_v19  ;;  %2264 = vst [vmem:[#allocation25_spill] sm:$0xff] %v1849_v61  ;;  %v552_v23 = vmul.f32 %v539_v45, %v1849_v61  ;;  %v574_v45 = vmul.f32 %v1773_v44, %v1691_v62 }
 0x1aa   : > { %v1802_v6 = vpop.permute.xlu0 %500  ;;  %v1804_v7 = vpop.permute.xlu1 %463  ;;  %v754_v44 = vmul.f32 %v1781_v49, %v1715_v21 }
 0x1ab   : > { %v583_v32 = vadd.f32 %v575_v18, %v551_v60 }
 0x1ae   : > { %v1809_v11 = vpop.permute.xlu0 %471  ;;  %v466_v12 = vpop.permute.xlu1 %465 }
 0x1af   : > { %v478_v1 = vsel %vm475_vm9, %v1804_v7, %v1809_v11 }
 0x1b2   : > { %v1829_v20 = vpop.permute.xlu0 %508  ;;  %v503_v24 = vpop.permute.xlu1 %502 }
 0x1b3   : > { %v519_v26 = vsel %vm512_vm12, %v1829_v20, %v1802_v6  ;;  %v515_v17 = vsel %vm512_vm12, %v1802_v6, %v1829_v20 }
 0x1b6   : > { %v507_v13 = vpop.permute.xlu0 %506  ;;  %v474_v16 = vpop.permute.xlu1 %473 }
 0x1b7   : > { %v514_v5 = vsel %vm512_vm12, %v499_v3, %v507_v13  ;;  %v518_v8 = vsel %vm512_vm12, %v507_v13, %v499_v3  ;;  %v1888_v3 = vsel %vm1819_vm11, %v478_v1, 0.0  ;;  %v1901_v1 = vsel %vm1863_vm14, %v519_v26, 0.0 }
 0x1b8   : > { %v1879_v10 = vsel %vm1855_vm13, %v514_v5, 0.0  ;;  %v1883_v25 = vsel %vm1863_vm14, %v518_v8, 0.0  ;;  %v727_v5 = vmul.f32 %v1779_v48, %v1827_v19  ;;  %v576_v8 = vmul.f32 %v1775_v46, %v1700_v9 }
 0x1b9   : > { %2269 = vst [vmem:[#allocation26_spill] sm:$0xff] %v1883_v25  ;;  %v607_v13 = vmul.f32 %v595_v55, %v1879_v10  ;;  %v608_v61 = vmul.f32 %v595_v55, %v1883_v25  ;;  %v483_v60 = vsel %vm475_vm9, %v474_v16, %v466_v12  ;;  %v550_v19 = vmul.f32 %v1769_v43, %v1843_v58 }
 0x1ba   : > { %v511_v39 = vpop.permute.xlu1 %510  ;;  %v730_v63 = vmul.f32 %v1746_v34, %v1888_v3  ;;  %v579_v46 = vmul.f32 %v1761_v40, %v1717_v22  ;;  %v584_v55 = vadd.f32 %v576_v8, %v552_v23  ;;  %v786_v43 = vmul.f32 %v1789_v54, %v1901_v1 }
 0x1bb   : > { %v615_v18 = vadd.f32 %v607_v13, %v583_v32  ;;  %v516_v26 = vsel %vm512_vm12, %v503_v24, %v511_v39  ;;  %v581_v32 = vadd.f32 %v573_v33, %v549_v0  ;;  %v758_v13 = vadd.f32 %v750_v35, %v726_v29 }
 0x1bc   : > { %v783_v62 = vmul.f32 %v1793_v57, %v1879_v10  ;;  %v1923_v58 = vsel %vm1813_vm10, %v483_v60, 0.0  ;;  %v759_v25 = vadd.f32 %v751_v15, %v727_v5  ;;  %v479_v34 = vsel %vm475_vm9, %v466_v12, %v474_v16 }
 0x1bd   : > { %799 = vrot.lane.b32.xlu0 %v615_v18, %s1397_s15  ;;  %v616_v29 = vadd.f32 %v608_v61, %v584_v55  ;;  %v1935_v33 = vsel %vm1855_vm13, %v516_v26, 0.0  ;;  %v762_v12 = vadd.f32 %v754_v44, %v730_v63  ;;  %v555_v16 = vmul.f32 %v1734_v31, %v1923_v58 }
 0x1be   : > { %v505_v49 = vpop.permute.xlu1 %504  ;;  %v482_v5 = vsel %vm475_vm9, %v1809_v11, %v1804_v7  ;;  %v1960_v63 = vsel %vm1819_vm11, %v479_v34, 0.0  ;;  %v791_v8 = vadd.f32 %v783_v62, %v759_v25  ;;  %v725_v26 = vmul.f32 %v1777_v47, %v1835_v28 }
 0x1bf   : > { %v513_v0 = vsel %vm512_vm12, %v1795_v59, %v505_v49  ;;  %v517_v23 = vsel %vm512_vm12, %v505_v49, %v1795_v59  ;;  %v520_v49 = vsel %vm512_vm12, %v511_v39, %v503_v24  ;;  %v1962_v60 = vadd.f32 %v786_v43, %v762_v12  ;;  %v2270_v43 = vld [vmem:[#allocation20_spill] sm:$0xff]  ;;  %v2272_v12 = vld [vmem:[#allocation18_spill] sm:$0xff] }
 0x1c0   : > { %v1939_v35 = vsel %vm1855_vm13, %v513_v0, 0.0  ;;  %v1943_v15 = vsel %vm1863_vm14, %v517_v23, 0.0  ;;  %v611_v39 = vmul.f32 %v1766_v42, %v1935_v33  ;;  %v1974_v7 = vsel %vm1863_vm14, %v520_v49, 0.0 }
 0x1c1   : > { %v605_v59 = vmul.f32 %v1787_v53, %v1939_v35  ;;  %v782_v61 = vmul.f32 %v1791_v56, %v1943_v15  ;;  %807 = vrot.lane.b32.xlu0 %v616_v29, %s1397_s15  ;;  %v606_v24 = vmul.f32 %v1787_v53, %v1943_v15  ;;  %v556_v25 = vmul.f32 %v1734_v31, %v1960_v63  ;;  %v2271_v29 = vld [vmem:[#allocation17_spill] sm:$0xff] }
 0x1c2   : > { %v587_v62 = vadd.f32 %v579_v46, %v555_v16  ;;  %v582_v53 = vadd.f32 %v574_v45, %v550_v19  ;;  %v749_v11 = vmul.f32 %v1783_v50, %v1683_v51  ;;  %v492_v47 = vsel %vm1813_vm10, %v482_v5, 0.0 }
 0x1c3   : > { %v613_v18 = vadd.f32 %v605_v59, %v581_v32  ;;  %v1968_v44 = vadd.f32 %v782_v61, %v758_v13  ;;  %v1976_v34 = vpop.permute.xlu0 %634  ;;  %v580_v31 = vmul.f32 %v1761_v40, %v1728_v30  ;;  %v612_v27 = vmul.f32 %v1766_v42, %v1974_v7 }
 0x1c4   : > { %v781_v19 = vmul.f32 %v1791_v56, %v1939_v35  ;;  %v619_v45 = vadd.f32 %v611_v39, %v587_v62  ;;  %v614_v46 = vadd.f32 %v606_v24, %v582_v53  ;;  %v529_v50 = vsel %vm1855_vm13, %v515_v17, 0.0 }
 0x1c5   : > { %844 = vrot.lane.b32.xlu0 %v791_v8, %s1398_s13  ;;  %797 = vrot.lane.b32.xlu1 %v613_v18, %s1397_s15  ;;  %v731_v14 = vmul.f32 %v1751_v36, %v1923_v58  ;;  %v588_v6 = vadd.f32 %v580_v31, %v556_v25  ;;  %v757_v40 = vadd.f32 %v749_v11, %v725_v26  ;;  %v2273_v18 = vld [vmem:[#allocation25_spill] sm:$0xff]  ;;  %v2274_v31 = vld [vmem:[#allocation19_spill] sm:$0xff] }
 0x1c6   : > { %v553_v20 = vmul.f32 %v1771_v37, %v492_v47  ;;  %v787_v56 = vmul.f32 %v1763_v41, %v1935_v33  ;;  %v755_v13 = vmul.f32 %v1754_v38, %v1717_v22  ;;  %v609_v0 = vmul.f32 %v2270_v43, %v529_v50 }
 0x1c7   : > { %v2003_v42 = vpop.permute.xlu0 %626  ;;  %v620_v32 = vadd.f32 %v612_v27, %v588_v6  ;;  %v789_v4 = vadd.f32 %v781_v19, %v757_v40  ;;  %v732_v23 = vmul.f32 %v1751_v36, %v1960_v63  ;;  %v577_v16 = vmul.f32 %v2272_v12, %v2271_v29  ;;  %v2275_v19 = vld [vmem:[#allocation26_spill] sm:$0xff] }
 0x1c8   : > { %v763_v49 = vadd.f32 %v755_v13, %v731_v14  ;;  %v554_v59 = vmul.f32 %v1771_v37, %v1888_v3  ;;  %v788_v61 = vmul.f32 %v1763_v41, %v1974_v7  ;;  %v756_v8 = vmul.f32 %v1754_v38, %v1728_v30 }
 0x1c9   : > { %803 = vrot.lane.b32.xlu0 %v619_v45, %s1397_s15  ;;  %805 = vrot.lane.b32.xlu1 %v614_v46, %s1397_s15  ;;  %v585_v5 = vadd.f32 %v577_v16, %v553_v20  ;;  %v752_v36 = vmul.f32 %v1785_v52, %v1700_v9  ;;  %v578_v24 = vmul.f32 %v2272_v12, %v1715_v21 }
 0x1ca   : > { %v795_v39 = vadd.f32 %v787_v56, %v763_v49  ;;  %v728_v26 = vmul.f32 %v1779_v48, %v2273_v18  ;;  %v610_v37 = vmul.f32 %v2270_v43, %v1901_v1  ;;  %v764_v53 = vadd.f32 %v756_v8, %v732_v23 }
 0x1cb   : > { %v631_v55 = vpop.permute.xlu1 %630  ;;  %v617_v41 = vadd.f32 %v609_v0, %v585_v5  ;;  %v729_v27 = vmul.f32 %v2274_v31, %v492_v47  ;;  %v784_v48 = vmul.f32 %v1793_v57, %v2275_v19  ;;  %v586_v46 = vadd.f32 %v578_v24, %v554_v59  ;;  %v2277_v5 = vld [vmem:[#allocation24_spill] sm:$0xff] }
 0x1cc   : > { %v687_v25 = vpop.permute.xlu0 %686  ;;  %v641_v11 = vmul.f32 %v631_v55, %v492_v47  ;;  %v642_v38 = vmul.f32 %v631_v55, %v1888_v3  ;;  %v796_v45 = vadd.f32 %v788_v61, %v764_v53  ;;  %v785_v20 = vmul.f32 %v1789_v54, %v529_v50  ;;  %v2276_v55 = vld [vmem:[#allocation21_spill] sm:$0xff] }
 0x1cd   : > { %811 = vrot.lane.b32.xlu0 %v620_v32, %s1397_s15  ;;  %842 = vrot.lane.b32.xlu1 %v789_v4, %s1398_s13  ;;  %v697_v14 = vmul.f32 %v687_v25, %v529_v50  ;;  %v698_v6 = vmul.f32 %v687_v25, %v1901_v1  ;;  %v753_v32 = vmul.f32 %v2276_v55, %v2271_v29 }
 0x1ce   : > { %v760_v47 = vadd.f32 %v752_v36, %v728_v26  ;;  %v643_v50 = vmul.f32 %v1976_v34, %v1923_v58  ;;  %v644_v0 = vmul.f32 %v1976_v34, %v1960_v63 }
 0x1cf   : > { %v761_v43 = vadd.f32 %v753_v32, %v729_v27 }
 0x1d0   : > { %v655_v62 = vpop.permute.xlu1 %654  ;;  %v792_v54 = vadd.f32 %v784_v48, %v760_v47  ;;  %v679_v63 = vpop.permute.xlu0 %678 }
 0x1d1   : > { %v665_v17 = vmul.f32 %v655_v62, %v2271_v29  ;;  %v666_v52 = vmul.f32 %v655_v62, %v1715_v21  ;;  %848 = vrot.lane.b32.xlu0 %v795_v39, %s1398_s13  ;;  %801 = vrot.lane.b32.xlu1 %v617_v41, %s1397_s15  ;;  %v618_v21 = vadd.f32 %v610_v37, %v586_v46  ;;  %v1399_v62 = vmov 10  }
 0x1d2   : > { %v793_v23 = vadd.f32 %v785_v20, %v761_v43  ;;  %v693_v39 = vmul.f32 %v679_v63, %v1939_v35  ;;  %v694_v24 = vmul.f32 %v679_v63, %v1943_v15  ;;  %1249 = vset.pattern.permute.xlu1 %v1399_v62  ;;  %1250 = vset.pattern.permute.xlu0 %v1399_v62  ;;  %v2282_v35 = vld [vmem:[#allocation23_spill] sm:$0xff] }
 0x1d3   : > { %v673_v40 = vadd.f32 %v665_v17, %v641_v11  ;;  %v674_v3 = vadd.f32 %v666_v52, %v642_v38  ;;  %v2281_v11 = vld [vmem:[#allocation12_spill] sm:$0xff]  ;;  %v639_v15 = vmul.f32 %v2003_v42, %v2282_v35  ;;  %v640_v38 = vmul.f32 %v2003_v42, %v2273_v18 }
 0x1d4   : > { %v659_v56 = vpop.permute.xlu1 %658 }
 0x1d5   : > { %856 = vrot.lane.b32.xlu0 %v796_v45, %s1398_s13  ;;  %v2043_v57 = vadd.f32 %v697_v14, %v673_v40  ;;  %v2045_v4 = vadd.f32 %v698_v6, %v674_v3  ;;  %v667_v13 = vmul.f32 %v659_v56, %v1717_v22  ;;  %v668_v1 = vmul.f32 %v659_v56, %v1728_v30  ;;  %v2283_v45 = vld [vmem:[#allocation13_spill] sm:$0xff]  ;;  %v2284_v14 = vld [vmem:[#allocation14_spill] sm:$0xff] }
 0x1d6   : > { %809 = vrot.lane.b32.xlu1 %v618_v21, %s1397_s15 }
 0x1d7   : > { %v675_v12 = vadd.f32 %v667_v13, %v643_v50  ;;  %v676_v16 = vadd.f32 %v668_v1, %v644_v0 }
 0x1d9   : > { %852 = vrot.lane.b32.xlu0 %v792_v54, %s1398_s13  ;;  %v691_v29 = vpop.permute.xlu1 %690  ;;  %v2285_v54 = vld [vmem:[#allocation22_spill] sm:$0xff] }
 0x1da   : > { %846 = vrot.lane.b32.xlu1 %v793_v23, %s1398_s13  ;;  %v699_v22 = vmul.f32 %v691_v29, %v1935_v33  ;;  %v700_v30 = vmul.f32 %v691_v29, %v1974_v7  ;;  %v2278_v7 = vld [vmem:[#allocation15_spill] sm:$0xff]  ;;  %vm458_vm2 = vcmp.lt.s32.totalorder %v2285_v54, 240 }
 0x1dc   : > { %v2058_v49 = vadd.f32 %v699_v22, %v675_v12  ;;  %v2060_v59 = vadd.f32 %v700_v30, %v676_v16 }
 0x1dd   : > { %900 = vperm.xlu0 %1250, %v2281_v11  }
 0x1de   : > { %854 = vrot.lane.b32.xlu1 %v1962_v60, %s1398_s13  ;;  %v623_v58 = vpop.permute.xlu1 %622 }
 0x1df   : > { %v637_v61 = vmul.f32 %v623_v58, %v1835_v28  ;;  %v638_v8 = vmul.f32 %v623_v58, %v2277_v5  ;;  %v2279_v28 = vld [vmem:[#allocation16_spill] sm:$0xff] }
 0x1e2   : > { %850 = vrot.lane.b32.xlu1 %v1968_v44, %s1398_s13  ;;  %s1317_s13 = scalar_lea.vmem %s1316_s29, 2048 }
 0x1e3   : > { %v647_v34 = vpop.permute.xlu1 %646  ;;  %p1319_p0 = scmp.lt.s32.totalorder %s1317_s13, %s1311_s9 }
 0x1e4   : > { %v661_v33 = vmul.f32 %v647_v34, %v1683_v51  ;;  %v662_v36 = vmul.f32 %v647_v34, %v2278_v7  ;;  %v2280_v51 = vld [vmem:[#allocation11_spill] sm:$0xff] }
 0x1e5   : > { %p1320_p2 = por %p1319_p0, %p1318_p10 }
 0x1e6   : > { %v669_v26 = vadd.f32 %v661_v33, %v637_v61  ;;  %v670_v60 = vadd.f32 %v662_v36, %v638_v8  ;;  %896 = vperm.xlu1 %1249, %v2280_v51  }
 0x1e7   : > { %v651_v37 = vpop.permute.xlu1 %650  ;;  %p1321_p4 = pnand %p1320_p2, %p1314_p7 }
 0x1e8   : > { %v2072_v25 = vadd.f32 %v693_v39, %v669_v26  ;;  %v2074_v44 = vadd.f32 %v694_v24, %v670_v60  ;;  %v663_v41 = vmul.f32 %v651_v37, %v2279_v28  ;;  %v664_v53 = vmul.f32 %v651_v37, %v1700_v9 }
 0x1ea   : > { %v671_v52 = vadd.f32 %v663_v41, %v639_v15  ;;  %v672_v31 = vadd.f32 %v664_v53, %v640_v38  ;;  %904 = vperm.xlu1 %1249, %v2283_v45  }
 0x1ec   : > { %v683_v17 = vpop.permute.xlu1 %682 }
 0x1ed   : > { %v695_v27 = vmul.f32 %v683_v17, %v1879_v10  ;;  %v696_v48 = vmul.f32 %v683_v17, %v2275_v19 }
 0x1ee   : > { %908 = vperm.xlu1 %1249, %v2284_v14   ;;  %v1254_v14 = vld [vmem:[%s2211_s3 + $0x8] sm:$0xff]  }
 0x1ef   : > { %v703_v9 = vadd.f32 %v695_v27, %v671_v52  ;;  %v704_v46 = vadd.f32 %v696_v48, %v672_v31 }
 0x22f   : > { %v800_v6 = vpop.permute.xlu0 %799 }
 0x233   : > { %v808_v40 = vpop.permute.xlu0 %807 }
 0x234   : > { %v819_v1 = vsel %vm813_vm15, %v808_v40, %v800_v6  ;;  %v815_v30 = vsel %vm813_vm15, %v800_v6, %v808_v40 }
 0x235   : > { %v828_v58 = vsel %vm455_vm1, %v819_v1, 0.0  ;;  %v837_v37 = vadd.f32 %v815_v30, %v704_v46 }
 0x236   : > { %v836_v41 = vadd.f32 %v828_v58, %v703_v9 }
 0x237   : > { %v845_v3 = vpop.permute.xlu0 %844  ;;  %v798_v20 = vpop.permute.xlu1 %797 }
 0x23b   : > { %v804_v56 = vpop.permute.xlu0 %803  ;;  %v806_v21 = vpop.permute.xlu1 %805 }
 0x23c   : > { %v818_v43 = vsel %vm813_vm15, %v806_v21, %v798_v20 }
 0x23d   : > { %v826_v63 = vsel %vm455_vm1, %v818_v43, 0.0 }
 0x23e   : > { %v834_v53 = vadd.f32 %v826_v63, %v2072_v25 }
 0x23f   : > { %v812_v42 = vpop.permute.xlu0 %811  ;;  %v843_v18 = vpop.permute.xlu1 %842 }
 0x240   : > { %v821_v19 = vsel %vm813_vm15, %v812_v42, %v804_v56  ;;  %v817_v0 = vsel %vm813_vm15, %v804_v56, %v812_v42 }
 0x241   : > { %v832_v23 = vsel %vm455_vm1, %v821_v19, 0.0  ;;  %v841_v5 = vadd.f32 %v817_v0, %v2060_v59 }
 0x242   : > { %v840_v61 = vadd.f32 %v832_v23, %v2058_v49  ;;  %v814_v49 = vsel %vm813_vm15, %v798_v20, %v806_v21 }
 0x243   : > { %v849_v55 = vpop.permute.xlu0 %848  ;;  %v802_v32 = vpop.permute.xlu1 %801  ;;  %v835_v15 = vadd.f32 %v814_v49, %v2074_v44  ;;  %v1253_v44 = vld [vmem:[%s2211_s3] sm:$0xff]  }
 0x247   : > { %v857_v47 = vpop.permute.xlu0 %856 }
 0x248   : > { %v810_v10 = vpop.permute.xlu1 %809  ;;  %v866_v29 = vsel %vm858_vm0, %v857_v47, %v849_v55  ;;  %v862_v34 = vsel %vm858_vm0, %v849_v55, %v857_v47 }
 0x249   : > { %v820_v13 = vsel %vm813_vm15, %v810_v10, %v802_v32  ;;  %v816_v16 = vsel %vm813_vm15, %v802_v32, %v810_v10  ;;  %v878_v8 = vsel %vm458_vm2, %v866_v29, 0.0  ;;  %v885_v59 = vadd.f32 %v862_v34, %v840_v61 }
 0x24a   : > { %v830_v12 = vsel %vm455_vm1, %v820_v13, 0.0  ;;  %v839_v36 = vadd.f32 %v816_v16, %v2045_v4  ;;  %v886_v28 = vadd.f32 %v878_v8, %v841_v5 }
 0x24b   : > { %v853_v22 = vpop.permute.xlu0 %852  ;;  %v838_v33 = vadd.f32 %v830_v12, %v2043_v57 }
 0x24c   : > { %v847_v50 = vpop.permute.xlu1 %846  ;;  %v864_v39 = vsel %vm858_vm0, %v853_v22, %v845_v3  ;;  %v860_v4 = vsel %vm858_vm0, %v845_v3, %v853_v22 }
 0x24d   : > { %v874_v51 = vsel %vm458_vm2, %v864_v39, 0.0  ;;  %v881_v31 = vadd.f32 %v860_v4, %v836_v41 }
 0x24e   : > { %v882_v25 = vadd.f32 %v874_v51, %v837_v37 }
 0x250   : > { %v855_v7 = vpop.permute.xlu1 %854 }
 0x251   : > { %v861_v24 = vsel %vm858_vm0, %v847_v50, %v855_v7  ;;  %v865_v26 = vsel %vm858_vm0, %v855_v7, %v847_v50 }
 0x252   : > { %v876_v60 = vsel %vm458_vm2, %v865_v26, 0.0  ;;  %v883_v57 = vadd.f32 %v861_v24, %v838_v33 }
 0x253   : > { %v884_v62 = vadd.f32 %v876_v60, %v839_v36 }
 0x254   : > { %v851_v11 = vpop.permute.xlu1 %850  ;;  %v893_v35 = vpack.c.bf16 %v885_v59, %v883_v57 }
 0x255   : > { %v859_v38 = vsel %vm858_vm0, %v843_v18, %v851_v11  ;;  %v863_v17 = vsel %vm858_vm0, %v851_v11, %v843_v18  ;;  %v894_v52 = vpack.c.bf16 %v886_v28, %v884_v62 }
 0x256   : > { %v872_v27 = vsel %vm458_vm2, %v863_v17, 0.0  ;;  %v879_v48 = vadd.f32 %v859_v38, %v834_v53 }
 0x257   : > { %v880_v45 = vadd.f32 %v872_v27, %v835_v15  ;;  %940 = vmatprep.subr.bf16.mxu1 %v894_v52 }
 0x258   : > { %941 = vmatpush1.bf16.msra.mxu1 %v893_v35  ;;  %v891_v9 = vpack.c.bf16 %v881_v31, %v879_v48  ;;  %v901_v56 = vpop.permute.xlu0 %900 }
 0x259   : > { %v892_v46 = vpack.c.bf16 %v882_v25, %v880_v45 }
 0x25b   : > { %942 = vmatprep.subr.bf16.mxu1 %v892_v46 }
 0x25c   : > { %943 = vmatpush1.bf16.msra.mxu1 %v891_v9 }
 0x25f   : > { %1142 = vmatmul.mubr.msk.bf16.vlgmr.msra.gmra.mxu1 %vm921_vm3, %v1253_v44 }
 0x260   : > { %970 = vmatprep.mubr.bf16.mxu1 %v2286_v2 }
 0x261   : > { %v897_v6 = vpop.permute.xlu1 %896 }
 0x265   : > { %v905_v10 = vpop.permute.xlu1 %904 }
 0x267   : > { %1143 = vmatmul.mubr.msk.bf16.gmra.mxu1 %vm921_vm3, %v1254_v14 }
 0x269   : > { %v909_v30 = vpop.permute.xlu1 %908 }
 0x31f   : > { %v962_v40 = vpop.f32.mrf.mxu1 }
 0x320   : > { %v963_v3 = vadd.f32 %v962_v40, %v897_v6 }
 0x321   : > { %v964_v20 = vpop.f32.mrf.mxu1 }
 0x322   : > { %vm981_vm4 = vcmp.gt.f32.partialorder %v963_v3, 0.0  ;;  %v989_v21 = vmul.f32 0.2, %v963_v3  ;;  %v965_v42 = vadd.f32 %v964_v20, %v897_v6 }
 0x323   : > { %v966_v18 = vpop.f32.mrf.mxu1 }
 0x324   : > { %v997_v55 = vsel %vm981_vm4, %v963_v3, %v989_v21  ;;  %vm982_vm5 = vcmp.gt.f32.partialorder %v965_v42, 0.0  ;;  %v990_v32 = vmul.f32 0.2, %v965_v42  ;;  %v967_v47 = vadd.f32 %v966_v18, %v901_v56 }
 0x325   : > { %1005 = vst [vmem:[%s2147_s11] sm:$0xff] %v997_v55  ;;  %v968_v19 = vpop.f32.mrf.mxu1 }
 0x326   : > { %v998_v13 = vsel %vm982_vm5, %v965_v42, %v990_v32  ;;  %vm983_vm6 = vcmp.gt.f32.partialorder %v967_v47, 0.0  ;;  %v991_v1 = vmul.f32 0.2, %v967_v47  ;;  %v969_v43 = vadd.f32 %v968_v19, %v901_v56 }
 0x327   : > { %1006 = vst [vmem:[%s2147_s11 + $0x8] sm:$0xff] %v998_v13  ;;  %v972_v54 = vpop.f32.mrf.mxu1 }
 0x328   : > { %v999_v50 = vsel %vm983_vm6, %v967_v47, %v991_v1  ;;  %vm984_vm7 = vcmp.gt.f32.partialorder %v969_v43, 0.0  ;;  %v992_v0 = vmul.f32 0.2, %v969_v43  ;;  %v973_v23 = vadd.f32 %v972_v54, %v905_v10 }
 0x329   : > { %1007 = vst [vmem:[%s2147_s11 + $0x10] sm:$0xff] %v999_v50  ;;  %v974_v29 = vpop.f32.mrf.mxu1 }
 0x32a   : > { %v1000_v12 = vsel %vm984_vm7, %v969_v43, %v992_v0  ;;  %vm985_vm8 = vcmp.gt.f32.partialorder %v973_v23, 0.0  ;;  %v993_v16 = vmul.f32 0.2, %v973_v23  ;;  %v975_v22 = vadd.f32 %v974_v29, %v905_v10 }
 0x32b   : > { %1008 = vst [vmem:[%s2147_s11 + $0x18] sm:$0xff] %v1000_v12  ;;  %v976_v58 = vpop.f32.mrf.mxu1 }
 0x32c   : > { %v1001_v63 = vsel %vm985_vm8, %v973_v23, %v993_v16  ;;  %vm986_vm9 = vcmp.gt.f32.partialorder %v975_v22, 0.0  ;;  %v994_v34 = vmul.f32 0.2, %v975_v22  ;;  %v977_v61 = vadd.f32 %v976_v58, %v909_v30 }
 0x32d   : > { %1009 = vst [vmem:[%s2147_s11 + $0x20] sm:$0xff] %v1001_v63  ;;  %v978_v5 = vpop.f32.mrf.mxu1 }
 0x32e   : > { %v1002_v8 = vsel %vm986_vm9, %v975_v22, %v994_v34  ;;  %vm987_vm10 = vcmp.gt.f32.partialorder %v977_v61, 0.0  ;;  %v995_v33 = vmul.f32 0.2, %v977_v61  ;;  %v979_v7 = vadd.f32 %v978_v5, %v909_v30 }
 0x32f   : > { %1010 = vst [vmem:[%s2147_s11 + $0x28] sm:$0xff] %v1002_v8 }
 0x330   : > { %v1003_v36 = vsel %vm987_vm10, %v977_v61, %v995_v33  ;;  %vm988_vm11 = vcmp.gt.f32.partialorder %v979_v7, 0.0  ;;  %v996_v39 = vmul.f32 0.2, %v979_v7 }
 0x331   : > { %1011 = vst [vmem:[%s2147_s11 + $0x30] sm:$0xff] %v1003_v36 }
 0x332   : > { %v1004_v24 = vsel %vm988_vm11, %v979_v7, %v996_v39 }
 0x333   : > { %1012 = vst [vmem:[%s2147_s11 + $0x38] sm:$0xff] %v1004_v24 }
 0x334   : > { %1324 = shalt.err (!%p1321_p4)
}
 0x335   : > { %s1325_s12 = scalar_lea.hbm %s2163_s23, 1024  ;;  %s1329_s28 = scalar_lea.hbm %s2213_s5, 2048 }
 0x336   : > { %p1326_p9 = scmp.ne.s32.totalorder %s2163_s23, %s1325_s12  ;;  %p1330_p5 = scmp.lt.s32.totalorder %s2163_s23, %s2213_s5 }
 0x337   : > { %p1331_p8 = scmp.lt.s32.totalorder %s1329_s28, %s1325_s12 }
 0x338   : > { %p1327_p11 = pnand %p1326_p9, %p2287_p1 }
 0x339   : > { %p1332_p6 = por %p1331_p8, %p1330_p5 }
 0x33a   : > { %p1328_p3 = pneg %p1327_p11 }
 0x33c   : > { %p1333_p13 = pnand %p1332_p6, %p1328_p3 }
 0x33e   : > { %1336 = shalt.err (!%p1333_p13)
}
 0x33f   : > { %s1401_s17 = smov 256  }
 0x340   : > { %1156 = dma.vmem_to_hbm [thread:$0]  (%p2287_p1), %s2157_s25, 1024, %s2163_s23, %s1014_s26, %s1401_s17, %s1401_s17, %s1397_s15  }
 0x341 PF: > { %s1042_s8 = sand.u32 1, %s1367_s18   ;;  %p2288_p12 = scmp.ne.s32.totalorder %s2241_s6, 0 }
 0x342   : > { %p2289_p7 = scmp.ge.s32.totalorder %s1379_s21, 2  ;;  %s1043_s9 = scalar_lea.sflag [#allocation4], %s1042_s8 }
 0x344   : > { %p1166_p10 = pnand %p2289_p7, %p2288_p12 }
 0x346   : > { %p1167_p0 = pneg %p1166_p10 }
 0x348   : > { %1362 = dma.done.wait (%p1167_p0), %s1043_s9, 1024  }
 0x349   : > { %1364 = vsyncadd (%p1167_p0), %s1043_s9, 4294966272  ;;  %p21_p2 = scmp.ge.s32.totalorder %s1457_s24, 4   ;;  %s2290_s18 = smov %s1371_s19 }
 0x34a   : > { %s2291_s19 = smov %s1375_s20  ;;  %s2292_s20 = smov %s1469_s27 }
 0x34b   : > { %s2293_s21 = smov %s1457_s24  ;;  %23 = sbr.rel (!%p21_p2) target bundleno = 7 (0x7), region = 98 }
 0x350   :  { %1048 = vsyncpa [#allocation3], 1 }
 0x351   :  { %1050 = vsyncpa [#allocation3 + $0x1], 1 }
 0x352   :  { %1051 = vsyncpa [#allocation6], 1 }
 0x353   :  { %1053 = vsyncpa [#allocation6 + $0x1], 1 }
 0x354   :  { %1054 = vsyncpa [#allocation4], 1 }
 0x355   :  { %1056 = vsyncpa [#allocation4 + $0x1], 1 }

</bundles_post_ra>
